<compile_context>
chip_gen: v5e
topology: v5e:2x2
jax: 0.10.0
libtpu: 0.0.40
codegen_flags: <defaults>
</compile_context>

<pallas_src>
import jax
import jax.numpy as jnp
from jax.experimental import pallas as pl
from jax.experimental.pallas import tpu as pltpu

_LANE = 128        # TPU lane width: hidden layer widths are padded to this
_SUBLANE = 8
_MIN_SPLIT_TILE = 128   # only force >=2 grid steps if each half-tile is >= this


def _round_up(n, m):
    return ((n + m - 1) // m) * m


def _leaky_relu(z, slope=0.01):
    return jnp.where(z > 0, z, slope * z)


# ------------------------------- kernel -------------------------------------

def _mlp_kernel(x_ref,
                w1, b1, w2, b2, w3, b3, w4, b4, w5, b5, w6, b6,
                o_ref):
    def lin(h, w_r, b_r):
        # bf16 operands feed the MXU at full rate on v5e/v6e/v7x; f32 accumulation.
        # Bias add (f32) happens on the VPU after the MXU pop.
        return jnp.dot(h.astype(jnp.bfloat16), w_r[...],
                       preferred_element_type=jnp.float32) + b_r[...]

    h = x_ref[...]                      # already bf16 (cast once in the wrapper)
    h = _leaky_relu(lin(h, w1, b1))
    h = _leaky_relu(lin(h, w2, b2))
    h = _leaky_relu(lin(h, w3, b3))
    h = _leaky_relu(lin(h, w4, b4))
    h = _leaky_relu(lin(h, w5, b5))
    # Last layer weight is [128, num_targets] (unpadded output), so this writes a
    # native-width, contiguous output block — no padded slab, no wrapper slice pass.
    o_ref[...] = lin(h, w6, b6).astype(o_ref.dtype)


# ------------------------------- wrapper ------------------------------------

def spnn_forward(x, padded_params, num_targets, *, max_batch_tile=4096):
    """x: [B, F] f32 (or bf16).
    padded_params: list of (w [in_p, out_p] bf16, b [1, out_p] f32); the last layer's
    out dim is the true num_targets (unpadded).

    Returns [B, num_targets] f32.
    """
    B, F = x.shape
    out_dim = padded_params[-1][0].shape[1]
    assert out_dim == num_targets

    # Stream x in bf16: the kernel casts activations to bf16 at every dot anyway,
    # so this is numerically identical and halves x HBM read bytes.
    x = x.astype(jnp.bfloat16)

    # Batch tiling:
    #   * small batch  -> one step (or two, if each half is still >= _MIN_SPLIT_TILE,
    #     so multi-TC chips can shard the "parallel" batch axis),
    #   * large batch  -> 4096-row tiles to amortize the ~0.35 us/step grid overhead.
    Bp = max(_SUBLANE, _round_up(B, _SUBLANE))
    if Bp <= max_batch_tile:
        if Bp >= 2 * _MIN_SPLIT_TILE:
            Bp = _round_up(Bp, 2 * _SUBLANE)
            tile = Bp // 2               # >= 2 grid steps for mid-size batches
        else:
            tile = Bp                    # tiny batch: single step
    else:
        tile = max_batch_tile
        Bp = _round_up(Bp, tile)
    if Bp != B:
        x = jnp.pad(x, ((0, Bp - B), (0, 0)))

    grid = (Bp // tile,)

    # x: streamed along batch; weights/biases: full-array blocks, constant index_map
    # (stay resident in VMEM across the grid — total weight footprint ~150 KB).
    in_specs = [pl.BlockSpec((tile, F), lambda i: (i, 0))]
    flat_params = []
    for (w, b) in padded_params:
        in_specs.append(pl.BlockSpec(w.shape, lambda i: (0, 0)))
        in_specs.append(pl.BlockSpec(b.shape, lambda i: (0, 0)))
        flat_params.extend([w, b])

    # Native-width output block: last dim == full array last dim, so this is legal
    # even though num_targets < 128; the (Bp, num_targets) array is contiguous so the
    # writeback DMA runs at full rate.
    out_specs = pl.BlockSpec((tile, out_dim), lambda i: (i, 0))

    out = pl.pallas_call(
        _mlp_kernel,
        out_shape=jax.ShapeDtypeStruct((Bp, out_dim), jnp.float32),
        grid_spec=pl.GridSpec(
            grid=grid,
            in_specs=in_specs,
            out_specs=out_specs,
        ),
        compiler_params=pltpu.CompilerParams(
            dimension_semantics=("parallel",),
            # 32 MiB: above v5e's 16 MiB default scoped limit (needed for 4096-row
            # tiles + f32 intermediates), safely below v7x's 64 MiB physical VMEM.
            vmem_limit_bytes=32 * 1024 * 1024,
        ),
    )(x, *flat_params)

    if Bp != B:
        out = out[:B]
    return out


# ----------------------- parameter construction -----------------------------

def _init_linear(key, fan_in, fan_out):
    """PyTorch-style uniform init for nn.Linear: U(-1/sqrt(fan_in), 1/sqrt(fan_in))."""
    kw, kb = jax.random.split(key)
    bound = 1.0 / jnp.sqrt(fan_in)
    # PyTorch stores weight as (out, in)
    w = jax.random.uniform(kw, (fan_out, fan_in), jnp.float32, -bound, bound)
    b = jax.random.uniform(kb, (fan_out,), jnp.float32, -bound, bound)
    return w, b


def _weight_norm(v, g):
    # w = g * v / ||v||, norm over all dims except dim 0 (PyTorch default).
    norm = jnp.sqrt(jnp.sum(v * v, axis=1, keepdims=True))
    return g[:, None] * v / norm


def make_params(key, num_features, num_targets, hidden_size1=40, hidden_size2=80):
    """Returns list of (w [in, out] f32, b [out] f32) — the true (unpadded) weights."""
    dims = [(num_features, hidden_size1),
            (hidden_size1, hidden_size2),
            (hidden_size2, 128),
            (128, hidden_size2),
            (hidden_size2, hidden_size1),
            (hidden_size1, num_targets)]
    keys = jax.random.split(key, len(dims))
    params = []
    for idx, ((fi, fo), k) in enumerate(zip(dims, keys)):
        v, b = _init_linear(k, fi, fo)
        if idx < 5:
            # weight_norm wrapped layers (dense1..dense5): g initialized to ||v||.
            g = jnp.sqrt(jnp.sum(v * v, axis=1))
            w_eff = _weight_norm(v, g)
        else:
            w_eff = v  # dense6 is a plain Linear
        params.append((jnp.asarray(w_eff.T), jnp.asarray(b)))  # [in, out], [out]
    return params


def pad_params(params):
    """Zero-pad hidden layer widths to a multiple of 128 (lane-dense activations).
    The first layer's input dim and the LAST layer's output dim are left at their
    native sizes (output stays num_targets wide so the kernel writes a contiguous
    native-width output block).  Weights stored bf16, biases as [1, out_p] f32.
    Exact: padded activations are leaky_relu(0)=0 and zero weight rows add nothing."""
    n = len(params)
    padded = []
    for idx, (w, b) in enumerate(params):
        fi, fo = w.shape
        fi_p = fi if idx == 0 else _round_up(fi, _LANE)
        fo_p = fo if idx == n - 1 else _round_up(fo, _LANE)
        w_p = jnp.zeros((fi_p, fo_p), jnp.float32).at[:fi, :fo].set(w)
        b_p = jnp.zeros((1, fo_p), jnp.float32).at[0, :fo].set(b)
        padded.append((w_p.astype(jnp.bfloat16), b_p))
    return padded


def reference_forward(x, params):
    """Pure-JAX f32 reference with the true (unpadded) weights."""
    h = x
    for i, (w, b) in enumerate(params):
        h = h @ w + b
        if i < 5:
            h = _leaky_relu(h)
    return h


if __name__ == "__main__":
    num_features = 32
    num_targets = 8
    batch = 16

    key = jax.random.PRNGKey(0)
    kx, kp = jax.random.split(key)
    x = jax.random.normal(kx, (batch, num_features), jnp.float32)

    params = make_params(kp, num_features, num_targets)
    padded_params = pad_params(params)

    out = spnn_forward(x, padded_params, num_targets)
    out = jax.block_until_ready(out)

    ref = reference_forward(x, params)
    assert out.shape == (batch, num_targets)
    # bf16 MXU operands over 6 chained matmuls -> loose tolerance vs f32 reference.
    assert jnp.allclose(out, ref, atol=3e-2, rtol=3e-2), (
        "mismatch vs reference, max abs diff = %f" % float(jnp.max(jnp.abs(out - ref))))

    print("KERNEL_OK")
</pallas_src>

<mosaic_0001>
module attributes {stable_mosaic.version = 11 : i64} {
  func.func @_mlp_kernel(%arg0: i32, %arg1: memref<16x32xbf16, #tpu.memory_space<vmem>>, %arg2: memref<32x128xbf16, #tpu.memory_space<vmem>>, %arg3: memref<1x128xf32, #tpu.memory_space<vmem>>, %arg4: memref<128x128xbf16, #tpu.memory_space<vmem>>, %arg5: memref<1x128xf32, #tpu.memory_space<vmem>>, %arg6: memref<128x128xbf16, #tpu.memory_space<vmem>>, %arg7: memref<1x128xf32, #tpu.memory_space<vmem>>, %arg8: memref<128x128xbf16, #tpu.memory_space<vmem>>, %arg9: memref<1x128xf32, #tpu.memory_space<vmem>>, %arg10: memref<128x128xbf16, #tpu.memory_space<vmem>>, %arg11: memref<1x128xf32, #tpu.memory_space<vmem>>, %arg12: memref<128x8xbf16, #tpu.memory_space<vmem>>, %arg13: memref<1x8xf32, #tpu.memory_space<vmem>>, %arg14: memref<16x8xf32, #tpu.memory_space<vmem>>) attributes {dimension_semantics = [#tpu.dimension_semantics<parallel>], iteration_bounds = array<i64: 1>, scalar_prefetch = 0 : i64, scratch_operands = 0 : i64, tpu.core_type = #tpu.core_type<tc>, window_params = [{transform_indices = @transform_0, window_bounds = array<i64: 16, 32>}, {pipeline_mode = #tpu.pipeline_mode<synchronous>, transform_indices = @transform_1, window_bounds = array<i64: 32, 128>}, {pipeline_mode = #tpu.pipeline_mode<synchronous>, transform_indices = @transform_2, window_bounds = array<i64: 1, 128>}, {pipeline_mode = #tpu.pipeline_mode<synchronous>, transform_indices = @transform_3, window_bounds = array<i64: 128, 128>}, {pipeline_mode = #tpu.pipeline_mode<synchronous>, transform_indices = @transform_4, window_bounds = array<i64: 1, 128>}, {pipeline_mode = #tpu.pipeline_mode<synchronous>, transform_indices = @transform_5, window_bounds = array<i64: 128, 128>}, {pipeline_mode = #tpu.pipeline_mode<synchronous>, transform_indices = @transform_6, window_bounds = array<i64: 1, 128>}, {pipeline_mode = #tpu.pipeline_mode<synchronous>, transform_indices = @transform_7, window_bounds = array<i64: 128, 128>}, {pipeline_mode = #tpu.pipeline_mode<synchronous>, transform_indices = @transform_8, window_bounds = array<i64: 1, 128>}, {pipeline_mode = #tpu.pipeline_mode<synchronous>, transform_indices = @transform_9, window_bounds = array<i64: 128, 128>}, {pipeline_mode = #tpu.pipeline_mode<synchronous>, transform_indices = @transform_10, window_bounds = array<i64: 1, 128>}, {pipeline_mode = #tpu.pipeline_mode<synchronous>, transform_indices = @transform_11, window_bounds = array<i64: 128, 8>}, {pipeline_mode = #tpu.pipeline_mode<synchronous>, transform_indices = @transform_12, window_bounds = array<i64: 1, 8>}, {transform_indices = @transform_13, window_bounds = array<i64: 16, 8>}]} {
    %c0 = arith.constant 0 : index
    %c0_0 = arith.constant 0 : index
    %0 = vector.load %arg1[%c0, %c0_0] : memref<16x32xbf16, #tpu.memory_space<vmem>>, vector<16x32xbf16>
    %c0_1 = arith.constant 0 : index
    %c0_2 = arith.constant 0 : index
    %1 = vector.load %arg2[%c0_1, %c0_2] : memref<32x128xbf16, #tpu.memory_space<vmem>>, vector<32x128xbf16>
    %cst = arith.constant dense<0.000000e+00> : vector<16x128xf32>
    %2 = tpu.matmul %0, %1, %cst {dimension_numbers = #tpu.dot_dimension_numbers<[1], [0], [0], [1], [0, 0, 1, 1], [], []>} : vector<16x32xbf16>, vector<32x128xbf16>, vector<16x128xf32> -> vector<16x128xf32>
    %c0_3 = arith.constant 0 : index
    %c0_4 = arith.constant 0 : index
    %3 = vector.load %arg3[%c0_3, %c0_4] : memref<1x128xf32, #tpu.memory_space<vmem>>, vector<1x128xf32>
    %4 = vector.broadcast %3 : vector<1x128xf32> to vector<16x128xf32>
    %5 = arith.addf %2, %4 : vector<16x128xf32>
    %cst_5 = arith.constant 0.000000e+00 : f32
    %6 = vector.broadcast %cst_5 : f32 to vector<16x128xf32>
    %7 = arith.cmpf ogt, %5, %6 : vector<16x128xf32>
    %cst_6 = arith.constant 0.00999999977 : f32
    %8 = vector.broadcast %cst_6 : f32 to vector<16x128xf32>
    %9 = arith.mulf %8, %5 : vector<16x128xf32>
    %10 = arith.select %7, %5, %9 : vector<16x128xi1>, vector<16x128xf32>
    %11 = arith.truncf %10 : vector<16x128xf32> to vector<16x128xbf16>
    %c0_7 = arith.constant 0 : index
    %c0_8 = arith.constant 0 : index
    %12 = vector.load %arg4[%c0_7, %c0_8] : memref<128x128xbf16, #tpu.memory_space<vmem>>, vector<128x128xbf16>
    %cst_9 = arith.constant dense<0.000000e+00> : vector<16x128xf32>
    %13 = tpu.matmul %11, %12, %cst_9 {dimension_numbers = #tpu.dot_dimension_numbers<[1], [0], [0], [1], [0, 0, 1, 1], [], []>} : vector<16x128xbf16>, vector<128x128xbf16>, vector<16x128xf32> -> vector<16x128xf32>
    %c0_10 = arith.constant 0 : index
    %c0_11 = arith.constant 0 : index
    %14 = vector.load %arg5[%c0_10, %c0_11] : memref<1x128xf32, #tpu.memory_space<vmem>>, vector<1x128xf32>
    %15 = vector.broadcast %14 : vector<1x128xf32> to vector<16x128xf32>
    %16 = arith.addf %13, %15 : vector<16x128xf32>
    %cst_12 = arith.constant 0.000000e+00 : f32
    %17 = vector.broadcast %cst_12 : f32 to vector<16x128xf32>
    %18 = arith.cmpf ogt, %16, %17 : vector<16x128xf32>
    %cst_13 = arith.constant 0.00999999977 : f32
    %19 = vector.broadcast %cst_13 : f32 to vector<16x128xf32>
    %20 = arith.mulf %19, %16 : vector<16x128xf32>
    %21 = arith.select %18, %16, %20 : vector<16x128xi1>, vector<16x128xf32>
    %22 = arith.truncf %21 : vector<16x128xf32> to vector<16x128xbf16>
    %c0_14 = arith.constant 0 : index
    %c0_15 = arith.constant 0 : index
    %23 = vector.load %arg6[%c0_14, %c0_15] : memref<128x128xbf16, #tpu.memory_space<vmem>>, vector<128x128xbf16>
    %cst_16 = arith.constant dense<0.000000e+00> : vector<16x128xf32>
    %24 = tpu.matmul %22, %23, %cst_16 {dimension_numbers = #tpu.dot_dimension_numbers<[1], [0], [0], [1], [0, 0, 1, 1], [], []>} : vector<16x128xbf16>, vector<128x128xbf16>, vector<16x128xf32> -> vector<16x128xf32>
    %c0_17 = arith.constant 0 : index
    %c0_18 = arith.constant 0 : index
    %25 = vector.load %arg7[%c0_17, %c0_18] : memref<1x128xf32, #tpu.memory_space<vmem>>, vector<1x128xf32>
    %26 = vector.broadcast %25 : vector<1x128xf32> to vector<16x128xf32>
    %27 = arith.addf %24, %26 : vector<16x128xf32>
    %cst_19 = arith.constant 0.000000e+00 : f32
    %28 = vector.broadcast %cst_19 : f32 to vector<16x128xf32>
    %29 = arith.cmpf ogt, %27, %28 : vector<16x128xf32>
    %cst_20 = arith.constant 0.00999999977 : f32
    %30 = vector.broadcast %cst_20 : f32 to vector<16x128xf32>
    %31 = arith.mulf %30, %27 : vector<16x128xf32>
    %32 = arith.select %29, %27, %31 : vector<16x128xi1>, vector<16x128xf32>
    %33 = arith.truncf %32 : vector<16x128xf32> to vector<16x128xbf16>
    %c0_21 = arith.constant 0 : index
    %c0_22 = arith.constant 0 : index
    %34 = vector.load %arg8[%c0_21, %c0_22] : memref<128x128xbf16, #tpu.memory_space<vmem>>, vector<128x128xbf16>
    %cst_23 = arith.constant dense<0.000000e+00> : vector<16x128xf32>
    %35 = tpu.matmul %33, %34, %cst_23 {dimension_numbers = #tpu.dot_dimension_numbers<[1], [0], [0], [1], [0, 0, 1, 1], [], []>} : vector<16x128xbf16>, vector<128x128xbf16>, vector<16x128xf32> -> vector<16x128xf32>
    %c0_24 = arith.constant 0 : index
    %c0_25 = arith.constant 0 : index
    %36 = vector.load %arg9[%c0_24, %c0_25] : memref<1x128xf32, #tpu.memory_space<vmem>>, vector<1x128xf32>
    %37 = vector.broadcast %36 : vector<1x128xf32> to vector<16x128xf32>
    %38 = arith.addf %35, %37 : vector<16x128xf32>
    %cst_26 = arith.constant 0.000000e+00 : f32
    %39 = vector.broadcast %cst_26 : f32 to vector<16x128xf32>
    %40 = arith.cmpf ogt, %38, %39 : vector<16x128xf32>
    %cst_27 = arith.constant 0.00999999977 : f32
    %41 = vector.broadcast %cst_27 : f32 to vector<16x128xf32>
    %42 = arith.mulf %41, %38 : vector<16x128xf32>
    %43 = arith.select %40, %38, %42 : vector<16x128xi1>, vector<16x128xf32>
    %44 = arith.truncf %43 : vector<16x128xf32> to vector<16x128xbf16>
    %c0_28 = arith.constant 0 : index
    %c0_29 = arith.constant 0 : index
    %45 = vector.load %arg10[%c0_28, %c0_29] : memref<128x128xbf16, #tpu.memory_space<vmem>>, vector<128x128xbf16>
    %cst_30 = arith.constant dense<0.000000e+00> : vector<16x128xf32>
    %46 = tpu.matmul %44, %45, %cst_30 {dimension_numbers = #tpu.dot_dimension_numbers<[1], [0], [0], [1], [0, 0, 1, 1], [], []>} : vector<16x128xbf16>, vector<128x128xbf16>, vector<16x128xf32> -> vector<16x128xf32>
    %c0_31 = arith.constant 0 : index
    %c0_32 = arith.constant 0 : index
    %47 = vector.load %arg11[%c0_31, %c0_32] : memref<1x128xf32, #tpu.memory_space<vmem>>, vector<1x128xf32>
    %48 = vector.broadcast %47 : vector<1x128xf32> to vector<16x128xf32>
    %49 = arith.addf %46, %48 : vector<16x128xf32>
    %cst_33 = arith.constant 0.000000e+00 : f32
    %50 = vector.broadcast %cst_33 : f32 to vector<16x128xf32>
    %51 = arith.cmpf ogt, %49, %50 : vector<16x128xf32>
    %cst_34 = arith.constant 0.00999999977 : f32
    %52 = vector.broadcast %cst_34 : f32 to vector<16x128xf32>
    %53 = arith.mulf %52, %49 : vector<16x128xf32>
    %54 = arith.select %51, %49, %53 : vector<16x128xi1>, vector<16x128xf32>
    %55 = arith.truncf %54 : vector<16x128xf32> to vector<16x128xbf16>
    %c0_35 = arith.constant 0 : index
    %c0_36 = arith.constant 0 : index
    %56 = vector.load %arg12[%c0_35, %c0_36] : memref<128x8xbf16, #tpu.memory_space<vmem>>, vector<128x8xbf16>
    %cst_37 = arith.constant dense<0.000000e+00> : vector<16x8xf32>
    %57 = tpu.matmul %55, %56, %cst_37 {dimension_numbers = #tpu.dot_dimension_numbers<[1], [0], [0], [1], [0, 0, 1, 1], [], []>} : vector<16x128xbf16>, vector<128x8xbf16>, vector<16x8xf32> -> vector<16x8xf32>
    %c0_38 = arith.constant 0 : index
    %c0_39 = arith.constant 0 : index
    %58 = vector.load %arg13[%c0_38, %c0_39] : memref<1x8xf32, #tpu.memory_space<vmem>>, vector<1x8xf32>
    %59 = vector.broadcast %58 : vector<1x8xf32> to vector<16x8xf32>
    %60 = arith.addf %57, %59 : vector<16x8xf32>
    %c0_40 = arith.constant 0 : index
    %c0_41 = arith.constant 0 : index
    %61 = vector.load %arg14[%c0_40, %c0_41] : memref<16x8xf32, #tpu.memory_space<vmem>>, vector<16x8xf32>
    tpu.vector_store %arg14[%c0_40, %c0_41], %60 {strides = array<i32>} : memref<16x8xf32, #tpu.memory_space<vmem>>, vector<16x8xf32>,
    return
  }
  func.func @transform_0(%arg0: i32) -> (i32, i32) {
    %c0_i32 = arith.constant 0 : i32
    %c0_i32_0 = arith.constant 0 : i32
    return %arg0, %c0_i32 : i32, i32
  }
  func.func @transform_1(%arg0: i32) -> (i32, i32) {
    %c0_i32 = arith.constant 0 : i32
    %c0_i32_0 = arith.constant 0 : i32
    %c0_i32_1 = arith.constant 0 : i32
    return %c0_i32, %c0_i32_0 : i32, i32
  }
  func.func @transform_2(%arg0: i32) -> (i32, i32) {
    %c0_i32 = arith.constant 0 : i32
    %c0_i32_0 = arith.constant 0 : i32
    %c0_i32_1 = arith.constant 0 : i32
    return %c0_i32, %c0_i32_0 : i32, i32
  }
  func.func @transform_3(%arg0: i32) -> (i32, i32) {
    %c0_i32 = arith.constant 0 : i32
    %c0_i32_0 = arith.constant 0 : i32
    %c0_i32_1 = arith.constant 0 : i32
    return %c0_i32, %c0_i32_0 : i32, i32
  }
  func.func @transform_4(%arg0: i32) -> (i32, i32) {
    %c0_i32 = arith.constant 0 : i32
    %c0_i32_0 = arith.constant 0 : i32
    %c0_i32_1 = arith.constant 0 : i32
    return %c0_i32, %c0_i32_0 : i32, i32
  }
  func.func @transform_5(%arg0: i32) -> (i32, i32) {
    %c0_i32 = arith.constant 0 : i32
    %c0_i32_0 = arith.constant 0 : i32
    %c0_i32_1 = arith.constant 0 : i32
    return %c0_i32, %c0_i32_0 : i32, i32
  }
  func.func @transform_6(%arg0: i32) -> (i32, i32) {
    %c0_i32 = arith.constant 0 : i32
    %c0_i32_0 = arith.constant 0 : i32
    %c0_i32_1 = arith.constant 0 : i32
    return %c0_i32, %c0_i32_0 : i32, i32
  }
  func.func @transform_7(%arg0: i32) -> (i32, i32) {
    %c0_i32 = arith.constant 0 : i32
    %c0_i32_0 = arith.constant 0 : i32
    %c0_i32_1 = arith.constant 0 : i32
    return %c0_i32, %c0_i32_0 : i32, i32
  }
  func.func @transform_8(%arg0: i32) -> (i32, i32) {
    %c0_i32 = arith.constant 0 : i32
    %c0_i32_0 = arith.constant 0 : i32
    %c0_i32_1 = arith.constant 0 : i32
    return %c0_i32, %c0_i32_0 : i32, i32
  }
  func.func @transform_9(%arg0: i32) -> (i32, i32) {
    %c0_i32 = arith.constant 0 : i32
    %c0_i32_0 = arith.constant 0 : i32
    %c0_i32_1 = arith.constant 0 : i32
    return %c0_i32, %c0_i32_0 : i32, i32
  }
  func.func @transform_10(%arg0: i32) -> (i32, i32) {
    %c0_i32 = arith.constant 0 : i32
    %c0_i32_0 = arith.constant 0 : i32
    %c0_i32_1 = arith.constant 0 : i32
    return %c0_i32, %c0_i32_0 : i32, i32
  }
  func.func @transform_11(%arg0: i32) -> (i32, i32) {
    %c0_i32 = arith.constant 0 : i32
    %c0_i32_0 = arith.constant 0 : i32
    %c0_i32_1 = arith.constant 0 : i32
    return %c0_i32, %c0_i32_0 : i32, i32
  }
  func.func @transform_12(%arg0: i32) -> (i32, i32) {
    %c0_i32 = arith.constant 0 : i32
    %c0_i32_0 = arith.constant 0 : i32
    %c0_i32_1 = arith.constant 0 : i32
    return %c0_i32, %c0_i32_0 : i32, i32
  }
  func.func @transform_13(%arg0: i32) -> (i32, i32) {
    %c0_i32 = arith.constant 0 : i32
    %c0_i32_0 = arith.constant 0 : i32
    return %arg0, %c0_i32 : i32, i32
  }
}

</mosaic_0001>

<bundles_post_ra>
// kernel: tpu_custom_call.1
= control target key start
LH: loop header
LB: loop body
LE: loop exit
PB: predicated region body
PF: predicated region fallthrough
CT: control target
= control target key end

     0   :  { %18 = vsyncpa [#allocation3], 0  ;;  %s1142_s0 = inlined_call_operand.hbm [shape: bf16[16,32], index: 0, kind: input, shape index: {}]   ;;  %s1143_s1 = inlined_call_operand.hbm [shape: bf16[32,128], index: 1, kind: input, shape index: {}]   ;;  %s1144_s2 = inlined_call_operand.vmem [shape: f32[1,128], index: 2, kind: input, shape index: {}]   ;;  %s1145_s3 = inlined_call_operand.vmem [shape: bf16[128,128], index: 3, kind: input, shape index: {}]   ;;  %s1146_s4 = inlined_call_operand.vmem [shape: f32[1,128], index: 4, kind: input, shape index: {}]   ;;  %s1147_s5 = inlined_call_operand.hbm [shape: bf16[128,128], index: 5, kind: input, shape index: {}]   ;;  %s1148_s6 = inlined_call_operand.vmem [shape: f32[1,128], index: 6, kind: input, shape index: {}]   ;;  %s1149_s7 = inlined_call_operand.hbm [shape: bf16[128,128], index: 7, kind: input, shape index: {}]   ;;  %s1150_s8 = inlined_call_operand.vmem [shape: f32[1,128], index: 8, kind: input, shape index: {}]   ;;  %s1151_s9 = inlined_call_operand.hbm [shape: bf16[128,128], index: 9, kind: input, shape index: {}]   ;;  %s1152_s10 = inlined_call_operand.vmem [shape: f32[1,128], index: 10, kind: input, shape index: {}]   ;;  %s1153_s11 = inlined_call_operand.vmem [shape: bf16[128,8], index: 11, kind: input, shape index: {}]   ;;  %s1154_s12 = inlined_call_operand.vmem [shape: f32[1,8], index: 12, kind: input, shape index: {}]   ;;  %s1155_s13 = inlined_call_operand.vmem [shape: f32[16,8], index: 13, kind: output, shape index: {}]  }
   0x1   :  { %19 = vsyncpa [#allocation5], 0 }
   0x2   :  { %20 = vsyncpa [#allocation8], 0  ;;  %s38_s27 = sshll.u32 %s1143_s1, 4  ;;  %s978_s28 = smov [#allocation4]   ;;  %s39_s27 = int_to_ptr.hbm [resolvable:$true] %s38_s27 }
   0x3   :  { %s40_s29 = sshll.u32 %s978_s28, 4  ;;  %s72_s15 = sshll.u32 %s1149_s7, 4  ;;  %s41_s29 = int_to_ptr.vmem [resolvable:$true] %s40_s29  ;;  %s73_s15 = int_to_ptr.hbm [resolvable:$true] %s72_s15 }
   0x4   :  { %s979_s16 = smov 64   ;;  %s980_s17 = smov 4  }
   0x5   :  { %46 = dma.hbm_to_vmem [thread:$0]  %s39_s27, 256, %s41_s29, [#allocation5], %s979_s16, %s979_s16, %s980_s17  }
   0x6   :  { %s981_s18 = smov [#allocation7]   ;;  %s25_s22 = sshll.u32 %s1142_s0, 4  ;;  %s26_s22 = int_to_ptr.hbm [resolvable:$true] %s25_s22 }
   0x7   :  { %s74_s19 = sshll.u32 %s981_s18, 4  ;;  %s57_s24 = sshll.u32 %s1147_s5, 4  ;;  %s75_s19 = int_to_ptr.vmem [resolvable:$true] %s74_s19  ;;  %s58_s24 = int_to_ptr.hbm [resolvable:$true] %s57_s24 }
   0x8   :  { %80 = dma.hbm_to_vmem [thread:$0]  %s73_s15, 1024, %s75_s19, [#allocation8], %s979_s16, %s979_s16, %s980_s17  }
   0x9   :  { %s982_s25 = smov [#allocation2]   ;;  %s983_s7 = smov [#allocation6]  }
   0xa   :  { %s27_s26 = sshll.u32 %s982_s25, 4  ;;  %s59_s27 = sshll.u32 %s983_s7, 4  ;;  %s28_s26 = int_to_ptr.vmem [resolvable:$true] %s27_s26  ;;  %s60_s27 = int_to_ptr.vmem [resolvable:$true] %s59_s27 }
   0xb   :  { %33 = dma.hbm_to_vmem [thread:$0]  %s26_s22, 128, %s28_s26, [#allocation3], %s979_s16, %s979_s16, %s980_s17  }
   0xc   :  { %s87_s30 = sshll.u32 %s1151_s9, 4  ;;  %s984_s0 = smov [#allocation9]   ;;  %s88_s30 = int_to_ptr.hbm [resolvable:$true] %s87_s30 }
   0xd   :  { %65 = dma.hbm_to_vmem [thread:$0]  %s58_s24, 1024, %s60_s27, [#allocation5], %s979_s16, %s979_s16, %s980_s17  }
   0xe   :  { %s89_s14 = sshll.u32 %s984_s0, 4  ;;  %s90_s14 = int_to_ptr.vmem [resolvable:$true] %s89_s14 }
   0xf   :  { %95 = dma.hbm_to_vmem [thread:$0]  %s88_s30, 1024, %s90_s14, [#allocation8], %s979_s16, %s979_s16, %s980_s17  }
  0x10   :  { %972 = dma.done.wait [#allocation3], 128  }
  0x11   :  { %973 = vsyncadd [#allocation3], 4294967168 }
  0x12   :  { %974 = dma.done.wait [#allocation5], 1280  }
  0x13   :  { %975 = vsyncadd [#allocation5], 4294966016 }
  0x14   :  { %976 = dma.done.wait [#allocation8], 2048  }
  0x15   :  { %977 = vsyncadd [#allocation8], 4294965248  ;;  %v798_v0 = vld [vmem:[#allocation4 + $0x8] sm:$0xff]  ;;  %v806_v1 = vld [vmem:[%s1145_s3 + $0x38] sm:$0xff]  ;;  %vm150_vm0 = vcmask 261120   ;;  %vm613_vm11 = vcmask 64512  }
  0x16   :  { %160 = vmatpush.bf16.msra.mxu0 %v798_v0  ;;  %v797_v2 = vld [vmem:[#allocation4] sm:$0xff]  ;;  %v805_v3 = vld [vmem:[%s1145_s3 + $0x30] sm:$0xff]  ;;  %243 = vmatpush.bf16.msra.mxu1 %v806_v1  ;;  %v796_v4 = vld [vmem:[#allocation2] sm:$0xff] }
  0x17   :  { %v804_v5 = vld [vmem:[%s1145_s3 + $0x28] sm:$0xff]  ;;  %v803_v6 = vld [vmem:[%s1145_s3 + $0x20] sm:$0xff]  ;;  %v802_v7 = vld [vmem:[%s1145_s3 + $0x18] sm:$0xff] }
  0x18   :  { %v801_v8 = vld [vmem:[%s1145_s3 + $0x10] sm:$0xff]  ;;  %v800_v9 = vld [vmem:[%s1145_s3 + $0x8] sm:$0xff]  ;;  %v799_v10 = vld [vmem:[%s1145_s3] sm:$0xff] }
  0x19   :  { %v814_v11 = vld [vmem:[#allocation6 + $0x38] sm:$0xff]  ;;  %v813_v12 = vld [vmem:[#allocation6 + $0x30] sm:$0xff]  ;;  %v812_v13 = vld [vmem:[#allocation6 + $0x28] sm:$0xff] }
  0x1a   :  { %161 = vmatpush.bf16.msra.mxu0 %v797_v2  ;;  %244 = vmatpush.bf16.msra.mxu1 %v805_v3  ;;  %v811_v14 = vld [vmem:[#allocation6 + $0x20] sm:$0xff]  ;;  %v846_v16 = vld [vmem:[%s1144_s2] ss:$0 sm:$0xff]  ;;  %v810_v25 = vld [vmem:[#allocation6 + $0x18] sm:$0xff] }
  0x1b   :  { %332 = vmatpush.bf16.msra.mxu2 %v814_v11  ;;  %v809_v26 = vld [vmem:[#allocation6 + $0x10] sm:$0xff]  ;;  %v808_v27 = vld [vmem:[#allocation6 + $0x8] sm:$0xff]  ;;  %v807_v28 = vld [vmem:[#allocation6] sm:$0xff] }
  0x1c   :  { %v822_v29 = vld [vmem:[#allocation7 + $0x38] sm:$0xff]  ;;  %v821_v30 = vld [vmem:[#allocation7 + $0x30] sm:$0xff]  ;;  %v820_v31 = vld [vmem:[#allocation7 + $0x28] sm:$0xff] }
  0x1d   :  { %635 = vmatmul.msk.bf16.vlgmr.msra.gmra.mxu0 %vm150_vm0, %v796_v4  ;;  %421 = vmatpush.bf16.msra.mxu3 %v822_v29  ;;  %v819_v32 = vld [vmem:[#allocation7 + $0x20] sm:$0xff]  ;;  %v847_v34 = vld [vmem:[%s1146_s4] ss:$0 sm:$0xff]  ;;  %v818_v43 = vld [vmem:[#allocation7 + $0x18] sm:$0xff] }
  0x1e   :  { %245 = vmatpush.bf16.msra.mxu1 %v804_v5  ;;  %v817_v44 = vld [vmem:[#allocation7 + $0x10] sm:$0xff]  ;;  %v816_v45 = vld [vmem:[#allocation7 + $0x8] sm:$0xff]  ;;  %v815_v46 = vld [vmem:[#allocation7] sm:$0xff] }
  0x1f   :  { %333 = vmatpush.bf16.msra.mxu2 %v813_v12  ;;  %v830_v47 = vld [vmem:[#allocation9 + $0x38] sm:$0xff]  ;;  %v829_v48 = vld [vmem:[#allocation9 + $0x30] sm:$0xff]  ;;  %v828_v49 = vld [vmem:[#allocation9 + $0x28] sm:$0xff] }
  0x20   :  { %510 = vmatpush.bf16.msrb.mxu0 %v830_v47  ;;  %v827_v50 = vld [vmem:[#allocation9 + $0x20] sm:$0xff]  ;;  %v848_v52 = vld [vmem:[%s1148_s6] ss:$0 sm:$0xff]  ;;  %v826_v61 = vld [vmem:[#allocation9 + $0x18] sm:$0xff] }
  0x21   :  { %422 = vmatpush.bf16.msra.mxu3 %v821_v30  ;;  %v825_v62 = vld [vmem:[#allocation9 + $0x10] sm:$0xff]  ;;  %v824_v63 = vld [vmem:[#allocation9 + $0x8] sm:$0xff]  ;;  %v823_v0 = vld [vmem:[#allocation9] sm:$0xff] }
  0x22   :  { %246 = vmatpush.bf16.msra.mxu1 %v803_v6  ;;  %v838_v1 = vld [vmem:[%s1153_s11 + $0x38] sm:$0xff]  ;;  %v837_v2 = vld [vmem:[%s1153_s11 + $0x30] sm:$0xff]  ;;  %v836_v3 = vld [vmem:[%s1153_s11 + $0x28] sm:$0xff] }
  0x23   :  { %334 = vmatpush.bf16.msra.mxu2 %v812_v13  ;;  %v835_v4 = vld [vmem:[%s1153_s11 + $0x20] sm:$0xff] }
  0x24   :  { %511 = vmatpush.bf16.msrb.mxu0 %v829_v48  ;;  %v849_v6 = vld [vmem:[%s1150_s8] ss:$0 sm:$0xff] }
  0x25   :  { %423 = vmatpush.bf16.msra.mxu3 %v820_v31  ;;  %v851_v29 = vld [vmem:[%s1154_s12] ss:$0 sm:$0xff] }
  0x26   :  { %247 = vmatpush.bf16.msra.mxu1 %v802_v7 }
  0x27   :  { %335 = vmatpush.bf16.msra.mxu2 %v811_v14 }
  0x28   :  { %512 = vmatpush.bf16.msrb.mxu0 %v828_v49 }
  0x29   :  { %424 = vmatpush.bf16.msra.mxu3 %v819_v32 }
  0x2a   :  { %248 = vmatpush.bf16.msra.mxu1 %v801_v8 }
  0x2b   :  { %336 = vmatpush.bf16.msra.mxu2 %v810_v25 }
  0x2c   :  { %513 = vmatpush.bf16.msrb.mxu0 %v827_v50 }
  0x2d   :  { %425 = vmatpush.bf16.msra.mxu3 %v818_v43 }
  0x2e   :  { %249 = vmatpush.bf16.msra.mxu1 %v800_v9 }
  0x2f   :  { %337 = vmatpush.bf16.msra.mxu2 %v809_v26 }
  0x30   :  { %514 = vmatpush.bf16.msrb.mxu0 %v826_v61 }
  0x31   :  { %426 = vmatpush.bf16.msra.mxu3 %v817_v44 }
  0x32   :  { %250 = vmatpush.bf16.msra.mxu1 %v799_v10 }
  0x33   :  { %338 = vmatpush.bf16.msra.mxu2 %v808_v27 }
  0x34   :  { %515 = vmatpush.bf16.msrb.mxu0 %v825_v62 }
  0x35   :  { %427 = vmatpush.bf16.msra.mxu3 %v816_v45 }
  0x36   :  { %599 = vmatpush.bf16.msrb.mxu1 %v838_v1 }
  0x37   :  { %339 = vmatpush.bf16.msra.mxu2 %v807_v28 }
  0x38   :  { %516 = vmatpush.bf16.msrb.mxu0 %v824_v63 }
  0x39   :  { %428 = vmatpush.bf16.msra.mxu3 %v815_v46 }
  0x3a   :  { %600 = vmatpush.bf16.msrb.mxu1 %v837_v2 }
  0x3c   :  { %517 = vmatpush.bf16.msrb.mxu0 %v823_v0 }
  0x3e   :  { %601 = vmatpush.bf16.msrb.mxu1 %v836_v3 }
  0x42   :  { %602 = vmatpush.bf16.msrb.mxu1 %v835_v4 }
  0x9a   :  { %v163_v15 = vpop.f32.mrf.mxu0 }
  0x9b   :  { %v164_v17 = vadd.f32 %v846_v16, %v163_v15  ;;  %v834_v15 = vld [vmem:[%s1153_s11 + $0x18] sm:$0xff] }
  0x9c   :  { %603 = vmatpush.bf16.msrb.mxu1 %v834_v15 }
  0x9d   :  { %v170_v19 = vmul.f32 0.01, %v164_v17  ;;  %vm168_vm1 = vcmp.gt.f32.partialorder %v164_v17, 0.0 }
  0x9f   :  { %v172_v22 = vsel %vm168_vm1, %v164_v17, %v170_v19  ;;  %v832_v17 = vld [vmem:[%s1153_s11 + $0x8] sm:$0xff] }
  0xa2   :  { %v165_v18 = vpop.f32.mrf.mxu0 }
  0xa3   :  { %v166_v20 = vadd.f32 %v846_v16, %v165_v18  ;;  %v833_v16 = vld [vmem:[%s1153_s11 + $0x10] sm:$0xff]  ;;  %v831_v18 = vld [vmem:[%s1153_s11] sm:$0xff] }
  0xa4   :  { %604 = vmatpush.bf16.msrb.mxu1 %v833_v16 }
  0xa5   :  { %v171_v21 = vmul.f32 0.01, %v166_v20  ;;  %vm169_vm2 = vcmp.gt.f32.partialorder %v166_v20, 0.0 }
  0xa7   :  { %v173_v23 = vsel %vm169_vm2, %v166_v20, %v171_v21  ;;  %v850_v20 = vld [vmem:[%s1152_s10] ss:$0 sm:$0xff] }
  0xa8   :  { %v174_v24 = vpack.c.bf16 %v173_v23, %v172_v22  ;;  %605 = vmatpush.bf16.msrb.mxu1 %v832_v17 }
  0xaa   :  { %251 = vmatmul.bf16.vlgmr.msra.gmra.mxu1 %v174_v24 }
  0xac   :  { %606 = vmatpush.bf16.msrb.mxu1 %v831_v18 }
 0x127   :  { %v252_v33 = vpop.f32.mrf.mxu1 }
 0x128   :  { %v253_v35 = vadd.f32 %v847_v34, %v252_v33 }
 0x12a   :  { %v259_v37 = vmul.f32 0.01, %v253_v35  ;;  %vm257_vm3 = vcmp.gt.f32.partialorder %v253_v35, 0.0 }
 0x12c   :  { %v261_v40 = vsel %vm257_vm3, %v253_v35, %v259_v37 }
 0x12f   :  { %v254_v36 = vpop.f32.mrf.mxu1 }
 0x130   :  { %v255_v38 = vadd.f32 %v847_v34, %v254_v36 }
 0x132   :  { %v260_v39 = vmul.f32 0.01, %v255_v38  ;;  %vm258_vm4 = vcmp.gt.f32.partialorder %v255_v38, 0.0 }
 0x134   :  { %v262_v41 = vsel %vm258_vm4, %v255_v38, %v260_v39 }
 0x135   :  { %v263_v42 = vpack.c.bf16 %v262_v41, %v261_v40 }
 0x137   :  { %340 = vmatmul.bf16.vlgmr.msra.gmra.mxu2 %v263_v42 }
 0x1ba   :  { %v341_v51 = vpop.f32.mrf.mxu2 }
 0x1bb   :  { %v342_v53 = vadd.f32 %v848_v52, %v341_v51 }
 0x1bd   :  { %v348_v55 = vmul.f32 0.01, %v342_v53  ;;  %vm346_vm5 = vcmp.gt.f32.partialorder %v342_v53, 0.0 }
 0x1bf   :  { %v350_v58 = vsel %vm346_vm5, %v342_v53, %v348_v55 }
 0x1c2   :  { %v343_v54 = vpop.f32.mrf.mxu2 }
 0x1c3   :  { %v344_v56 = vadd.f32 %v848_v52, %v343_v54 }
 0x1c5   :  { %v349_v57 = vmul.f32 0.01, %v344_v56  ;;  %vm347_vm6 = vcmp.gt.f32.partialorder %v344_v56, 0.0 }
 0x1c7   :  { %v351_v59 = vsel %vm347_vm6, %v344_v56, %v349_v57 }
 0x1c8   :  { %v352_v60 = vpack.c.bf16 %v351_v59, %v350_v58 }
 0x1ca   :  { %429 = vmatmul.bf16.vlgmr.msra.gmra.mxu3 %v352_v60 }
 0x24d   :  { %v430_v5 = vpop.f32.mrf.mxu3 }
 0x24e   :  { %v431_v7 = vadd.f32 %v849_v6, %v430_v5 }
 0x250   :  { %v437_v9 = vmul.f32 0.01, %v431_v7  ;;  %vm435_vm7 = vcmp.gt.f32.partialorder %v431_v7, 0.0 }
 0x252   :  { %v439_v12 = vsel %vm435_vm7, %v431_v7, %v437_v9 }
 0x255   :  { %v432_v8 = vpop.f32.mrf.mxu3 }
 0x256   :  { %v433_v10 = vadd.f32 %v849_v6, %v432_v8 }
 0x258   :  { %vm436_vm8 = vcmp.gt.f32.partialorder %v433_v10, 0.0  ;;  %v438_v11 = vmul.f32 0.01, %v433_v10 }
 0x25a   :  { %v440_v13 = vsel %vm436_vm8, %v433_v10, %v438_v11 }
 0x25b   :  { %v441_v14 = vpack.c.bf16 %v440_v13, %v439_v12 }
 0x25d   :  { %518 = vmatmul.bf16.vlgmr.msrb.gmra.mxu0 %v441_v14 }
 0x2da   :  { %v519_v19 = vpop.f32.mrf.mxu0 }
 0x2db   :  { %v520_v21 = vadd.f32 %v850_v20, %v519_v19 }
 0x2dd   :  { %v526_v23 = vmul.f32 0.01, %v520_v21  ;;  %vm524_vm9 = vcmp.gt.f32.partialorder %v520_v21, 0.0 }
 0x2df   :  { %v528_v26 = vsel %vm524_vm9, %v520_v21, %v526_v23 }
 0x2e2   :  { %v521_v22 = vpop.f32.mrf.mxu0 }
 0x2e3   :  { %v522_v24 = vadd.f32 %v850_v20, %v521_v22 }
 0x2e5   :  { %vm525_vm10 = vcmp.gt.f32.partialorder %v522_v24, 0.0  ;;  %v527_v25 = vmul.f32 0.01, %v522_v24 }
 0x2e7   :  { %v529_v27 = vsel %vm525_vm10, %v522_v24, %v527_v25 }
 0x2e8   :  { %v530_v28 = vpack.c.bf16 %v529_v27, %v528_v26 }
 0x2ea   :  { %607 = vmatmul.bf16.vlgmr.msrb.gmra.mxu1 %v530_v28 }
 0x367   :  { %v608_v30 = vpop.f32.mrf.mxu1 }
 0x368   :  { %v609_v31 = vadd.f32 %v851_v29, %v608_v30 }
 0x36a   :  { %614 = vst.msk [vmem:[%s1155_s13] sm:$0xff] %vm613_vm11, %v609_v31 }
 0x36f   :  { %v610_v32 = vpop.f32.mrf.mxu1 }
 0x370   :  { %v611_v33 = vadd.f32 %v851_v29, %v610_v32 }
 0x372   :  { %615 = vst.msk [vmem:[%s1155_s13 + $0x8] sm:$0xff] %vm613_vm11, %v611_v33 }
 0x373   :  { %620 = vsyncpa [#allocation3], 1 }
 0x374   :  { %621 = vsyncpa [#allocation5], 1 }
 0x375   :  { %622 = vsyncpa [#allocation8], 1 }

</bundles_post_ra>
